<compile_context>
chip_gen: v5e
topology: v5e:2x2
jax: 0.10.0
libtpu: 0.0.40
codegen_flags: <defaults>
</compile_context>

<pallas_src>
import functools

import jax
import jax.numpy as jnp
import numpy as np
from jax.experimental import pallas as pl
from jax.experimental.pallas import tpu as pltpu


def _round_up(x, m):
    return (x + m - 1) // m * m


def _mid_kernel(x_ref, eps_ref,
                w1mu_ref, b1mu_ref, w1std_ref, b1std_ref,
                w2_ref, b2_ref, w3_ref, b3_ref,
                z_ref, kl_ref, *, std_shift, valid_rows):
    """One batch tile of the MID_model_small forward pass."""
    w_dtype = w1mu_ref.dtype
    x = x_ref[...].astype(w_dtype)                         # (TB, input_dim)

    # enlarge_layer (Linear + ReLU), split into lane-aligned mu / std halves.
    mu = jnp.dot(x, w1mu_ref[...], preferred_element_type=jnp.float32)
    mu = jnp.maximum(mu + b1mu_ref[...], 0.0)              # (TB, bd)  f32
    std_pre = jnp.dot(x, w1std_ref[...], preferred_element_type=jnp.float32)
    std_pre = jnp.maximum(std_pre + b1std_ref[...], 0.0)   # (TB, bd)  f32

    # std = softplus(std_pre - std_shift)   (stable log(1+exp(.)), f32 on EUP)
    std = jnp.logaddexp(std_pre - std_shift, 0.0)

    # reparameterization
    z = mu + std * eps_ref[...]                            # (TB, bd)  f32

    # decoder_layer: Linear + ReLU, Linear + ReLU (last N padded to 128 lanes;
    # padded weight/bias columns are zero, ReLU keeps them at 0).
    h2 = jnp.dot(z.astype(w_dtype), w2_ref[...], preferred_element_type=jnp.float32)
    h2 = jnp.maximum(h2 + b2_ref[...], 0.0)
    out = jnp.dot(h2.astype(w_dtype), w3_ref[...], preferred_element_type=jnp.float32)
    out = jnp.maximum(out + b3_ref[...], 0.0)              # (TB, out_pad) f32
    z_ref[...] = out.astype(z_ref.dtype)                   # bf16, lane-dense store

    # Per-tile KL sum:  sum_b sum_d -0.5 * (1 + 2 log(std) - mu^2 - std^2)
    # (log(std) matches torch.log(F.softplus(.)), same underflow behaviour.)
    log_std = jnp.log(std)
    kl = -0.5 * (1.0 + 2.0 * log_std - mu * mu - std * std)
    kl_row = jnp.sum(kl, axis=1, keepdims=True)            # (TB, 1)

    # Mask padded batch rows (static B) before reducing to one scalar per tile.
    tb = kl_row.shape[0]
    row = pl.program_id(0) * tb + jax.lax.broadcasted_iota(jnp.int32, kl_row.shape, 0)
    kl_row = jnp.where(row < valid_rows, kl_row, 0.0)
    tile_sum = jnp.sum(kl_row)
    kl_ref[...] = jnp.full(kl_ref.shape, tile_sum, dtype=kl_ref.dtype)


def mid_model_small_forward(x, epsilon, params, *, input_dim, output_dim,
                            bottleneck_scale=1, mid_lambda=1e-3, std_shift=0.5,
                            compute_dtype=jnp.bfloat16, out_dtype=jnp.bfloat16,
                            batch_tile=None):
    """Full MID_model_small forward in one Pallas call. Returns (z, mid_loss)."""
    w1, b1, w2, b2, w3, b3 = params
    B = x.shape[0]
    bd = input_dim * bottleneck_scale

    # --- layout prep (wrapper side; plumbing only, no compute hoisting) ------
    # Split enlarge weights into lane-aligned mu / std halves (bd not 128-aligned
    # at these sizes; fuse into one matmul once bd % 128 == 0).
    w1_mu, w1_std = w1[:, :bd], w1[:, bd:]
    b1_mu, b1_std = b1[:, :bd], b1[:, bd:]

    # Pad decoder output dim to a lane-dense multiple of 128 (no extra KL lane).
    out_pad = _round_up(output_dim, 128)
    w3p = jnp.zeros((w3.shape[0], out_pad), w3.dtype).at[:, :output_dim].set(w3)
    b3p = jnp.zeros((1, out_pad), b3.dtype).at[:, :output_dim].set(b3)

    # Batch tile: large tiles to amortize the ~0.35 us per-grid-step overhead,
    # but always >= 2 balanced tiles for B > 8 so v7x's two TensorCores split
    # the "parallel" batch axis.
    if batch_tile is None:
        if B <= 8:
            batch_tile = 8
        elif B <= 2048:
            batch_tile = _round_up((B + 1) // 2, 8)
        else:
            batch_tile = 1024
    batch_tile = max(8, batch_tile)
    b_pad = _round_up(B, batch_tile)
    grid_b = b_pad // batch_tile
    if b_pad != B:
        x = jnp.pad(x, ((0, b_pad - B), (0, 0)))
        epsilon = jnp.pad(epsilon, ((0, b_pad - B), (0, 0)))

    # Weights go to the MXU in bf16 (f32 accumulate); biases/elementwise stay f32.
    cd = compute_dtype
    w1_mu_c, w1_std_c = w1_mu.astype(cd), w1_std.astype(cd)
    w2_c, w3_c = w2.astype(cd), w3p.astype(cd)

    # Explicit VMEM budget: double-buffered batch tiles + resident weights
    # (conservatively counted double-buffered), with margin, clamped to [32, 64] MiB.
    cd_bytes = jnp.dtype(cd).itemsize
    out_bytes = jnp.dtype(out_dtype).itemsize
    needed = (2 * batch_tile * input_dim * 4          # x tile
              + 2 * batch_tile * bd * 4               # epsilon tile
              + 2 * batch_tile * out_pad * out_bytes  # z output tile
              + 2 * 8 * 128 * 4)                      # kl partial tile
    w_bytes = (w1_mu_c.size + w1_std_c.size + w2_c.size + w3_c.size) * cd_bytes
    b_bytes = (b1_mu.size + b1_std.size + b2.size + b3p.size) * 4
    needed += 2 * (w_bytes + b_bytes)
    vmem_limit = int(max(min(2 * needed + (8 << 20), 64 << 20), 32 << 20))

    kernel = functools.partial(_mid_kernel, std_shift=float(std_shift),
                               valid_rows=int(B))

    def resident(arr):
        # Whole weight stays VMEM-resident across the batch grid.
        return pl.BlockSpec(arr.shape, lambda i: (0, 0))

    z_full, kl_part = pl.pallas_call(
        kernel,
        out_shape=(jax.ShapeDtypeStruct((b_pad, out_pad), out_dtype),
                   jax.ShapeDtypeStruct((grid_b, 8, 128), jnp.float32)),
        grid=(grid_b,),
        in_specs=[
            pl.BlockSpec((batch_tile, input_dim), lambda i: (i, 0)),
            pl.BlockSpec((batch_tile, bd), lambda i: (i, 0)),
            resident(w1_mu_c), resident(b1_mu),
            resident(w1_std_c), resident(b1_std),
            resident(w2_c), resident(b2),
            resident(w3_c), resident(b3p),
        ],
        out_specs=(
            pl.BlockSpec((batch_tile, out_pad), lambda i: (i, 0)),
            pl.BlockSpec((1, 8, 128), lambda i: (i, 0, 0)),
        ),
        compiler_params=pltpu.CompilerParams(
            dimension_semantics=("parallel",),
            vmem_limit_bytes=vmem_limit),
    )(x, epsilon, w1_mu_c, b1_mu, w1_std_c, b1_std, w2_c, b2, w3_c, b3p)

    z = z_full[:B, :output_dim].astype(jnp.float32)
    kl_total = jnp.sum(kl_part[:, 0, 0])                 # one scalar per tile
    mid_loss = (mid_lambda * kl_total / B).astype(jnp.float32)
    return z, mid_loss


def _reference_forward(x, epsilon, params, *, input_dim, output_dim,
                       bottleneck_scale, mid_lambda, std_shift,
                       compute_dtype=jnp.bfloat16):
    """Pure-JAX reference mirroring the kernel's dtype path (for validation)."""
    w1, b1, w2, b2, w3, b3 = params
    bd = input_dim * bottleneck_scale
    cd = compute_dtype
    h = jnp.dot(x.astype(cd), w1.astype(cd), preferred_element_type=jnp.float32) + b1
    h = jnp.maximum(h, 0.0)
    mu, std_pre = h[:, :bd], h[:, bd:]
    std = jnp.logaddexp(std_pre - std_shift, 0.0)
    z = mu + std * epsilon
    h2 = jnp.maximum(
        jnp.dot(z.astype(cd), w2.astype(cd), preferred_element_type=jnp.float32) + b2, 0.0)
    out = jnp.maximum(
        jnp.dot(h2.astype(cd), w3.astype(cd), preferred_element_type=jnp.float32) + b3, 0.0)
    kl = -0.5 * (1.0 + 2.0 * jnp.log(std) - mu * mu - std * std)
    mid_loss = mid_lambda * jnp.mean(jnp.sum(kl, axis=1))
    return out, mid_loss


def init_params(key, input_dim, output_dim, bottleneck_scale=1):
    """Deterministic parameter init (synthetic weights, not a checkpoint)."""
    bd = input_dim * bottleneck_scale
    k1, k2, k3, k4 = jax.random.split(key, 4)
    w1 = jax.random.normal(k1, (input_dim, 2 * bd), jnp.float32) * 0.1
    b1 = jax.random.normal(k4, (1, 2 * bd), jnp.float32) * 0.05
    w2 = jax.random.normal(k2, (bd, 2 * bd), jnp.float32) * 0.1
    b2 = jnp.zeros((1, 2 * bd), jnp.float32)
    w3 = jax.random.normal(k3, (2 * bd, output_dim), jnp.float32) * 0.1
    b3 = jnp.zeros((1, output_dim), jnp.float32)
    return (w1, b1, w2, b2, w3, b3)


def _run_and_check(B, input_dim, output_dim, bottleneck_scale, mid_lambda,
                   std_shift, seed):
    key = jax.random.PRNGKey(seed)
    kx, keps, kp = jax.random.split(key, 3)
    x = jax.random.normal(kx, (B, input_dim), jnp.float32)
    epsilon = jax.random.normal(keps, (B, input_dim * bottleneck_scale), jnp.float32)
    params = init_params(kp, input_dim, output_dim, bottleneck_scale)

    z, mid_loss = mid_model_small_forward(
        x, epsilon, params,
        input_dim=input_dim, output_dim=output_dim,
        bottleneck_scale=bottleneck_scale,
        mid_lambda=mid_lambda, std_shift=std_shift,
    )
    jax.block_until_ready((z, mid_loss))

    z_ref, loss_ref = _reference_forward(
        x, epsilon, params,
        input_dim=input_dim, output_dim=output_dim,
        bottleneck_scale=bottleneck_scale,
        mid_lambda=mid_lambda, std_shift=std_shift,
    )
    # z goes through a final bf16 store in the kernel -> slightly looser tol.
    np.testing.assert_allclose(np.asarray(z), np.asarray(z_ref), rtol=1e-2, atol=5e-3)
    np.testing.assert_allclose(np.asarray(mid_loss), np.asarray(loss_ref),
                               rtol=5e-3, atol=1e-5)
    assert z.shape == (B, output_dim)
    assert mid_loss.shape == ()


if __name__ == "__main__":
    # Small shapes consistent with the module: x is flattened to (B, input_dim).
    # Case 1: tiny batch (single tile).
    _run_and_check(B=8, input_dim=32, output_dim=16, bottleneck_scale=1,
                   mid_lambda=1e-3, std_shift=0.5, seed=0)
    # Case 2: batch that exercises the 2-tile grid and padded-row KL masking.
    _run_and_check(B=50, input_dim=32, output_dim=16, bottleneck_scale=1,
                   mid_lambda=1e-3, std_shift=0.5, seed=1)
    print("KERNEL_OK")
</pallas_src>

<mosaic_0001>
module attributes {stable_mosaic.version = 11 : i64} {
  func.func @_mid_kernel(%arg0: i32, %arg1: memref<8x32xf32, #tpu.memory_space<vmem>>, %arg2: memref<8x32xf32, #tpu.memory_space<vmem>>, %arg3: memref<32x32xbf16, #tpu.memory_space<vmem>>, %arg4: memref<1x32xf32, #tpu.memory_space<vmem>>, %arg5: memref<32x32xbf16, #tpu.memory_space<vmem>>, %arg6: memref<1x32xf32, #tpu.memory_space<vmem>>, %arg7: memref<32x64xbf16, #tpu.memory_space<vmem>>, %arg8: memref<1x64xf32, #tpu.memory_space<vmem>>, %arg9: memref<64x128xbf16, #tpu.memory_space<vmem>>, %arg10: memref<1x128xf32, #tpu.memory_space<vmem>>, %arg11: memref<8x128xbf16, #tpu.memory_space<vmem>>, %arg12: memref<1x8x128xf32, #tpu.memory_space<vmem>>) attributes {dimension_semantics = [#tpu.dimension_semantics<parallel>], iteration_bounds = array<i64: 1>, scalar_prefetch = 0 : i64, scratch_operands = 0 : i64, tpu.core_type = #tpu.core_type<tc>, window_params = [{transform_indices = @transform_0, window_bounds = array<i64: 8, 32>}, {transform_indices = @transform_1, window_bounds = array<i64: 8, 32>}, {pipeline_mode = #tpu.pipeline_mode<synchronous>, transform_indices = @transform_2, window_bounds = array<i64: 32, 32>}, {pipeline_mode = #tpu.pipeline_mode<synchronous>, transform_indices = @transform_3, window_bounds = array<i64: 1, 32>}, {pipeline_mode = #tpu.pipeline_mode<synchronous>, transform_indices = @transform_4, window_bounds = array<i64: 32, 32>}, {pipeline_mode = #tpu.pipeline_mode<synchronous>, transform_indices = @transform_5, window_bounds = array<i64: 1, 32>}, {pipeline_mode = #tpu.pipeline_mode<synchronous>, transform_indices = @transform_6, window_bounds = array<i64: 32, 64>}, {pipeline_mode = #tpu.pipeline_mode<synchronous>, transform_indices = @transform_7, window_bounds = array<i64: 1, 64>}, {pipeline_mode = #tpu.pipeline_mode<synchronous>, transform_indices = @transform_8, window_bounds = array<i64: 64, 128>}, {pipeline_mode = #tpu.pipeline_mode<synchronous>, transform_indices = @transform_9, window_bounds = array<i64: 1, 128>}, {transform_indices = @transform_10, window_bounds = array<i64: 8, 128>}, {transform_indices = @transform_11, window_bounds = array<i64: 1, 8, 128>}]} {
    %c0 = arith.constant 0 : index
    %c0_0 = arith.constant 0 : index
    %0 = vector.load %arg1[%c0, %c0_0] : memref<8x32xf32, #tpu.memory_space<vmem>>, vector<8x32xf32>
    %1 = arith.truncf %0 : vector<8x32xf32> to vector<8x32xbf16>
    %c0_1 = arith.constant 0 : index
    %c0_2 = arith.constant 0 : index
    %2 = vector.load %arg3[%c0_1, %c0_2] : memref<32x32xbf16, #tpu.memory_space<vmem>>, vector<32x32xbf16>
    %cst = arith.constant dense<0.000000e+00> : vector<8x32xf32>
    %3 = tpu.matmul %1, %2, %cst {dimension_numbers = #tpu.dot_dimension_numbers<[1], [0], [0], [1], [0, 0, 1, 1], [], []>} : vector<8x32xbf16>, vector<32x32xbf16>, vector<8x32xf32> -> vector<8x32xf32>
    %c0_3 = arith.constant 0 : index
    %c0_4 = arith.constant 0 : index
    %4 = vector.load %arg4[%c0_3, %c0_4] : memref<1x32xf32, #tpu.memory_space<vmem>>, vector<1x32xf32>
    %5 = vector.broadcast %4 : vector<1x32xf32> to vector<8x32xf32>
    %6 = arith.addf %3, %5 : vector<8x32xf32>
    %cst_5 = arith.constant 0.000000e+00 : f32
    %7 = vector.broadcast %cst_5 : f32 to vector<8x32xf32>
    %8 = arith.maximumf %6, %7 : vector<8x32xf32>
    %c0_6 = arith.constant 0 : index
    %c0_7 = arith.constant 0 : index
    %9 = vector.load %arg5[%c0_6, %c0_7] : memref<32x32xbf16, #tpu.memory_space<vmem>>, vector<32x32xbf16>
    %cst_8 = arith.constant dense<0.000000e+00> : vector<8x32xf32>
    %10 = tpu.matmul %1, %9, %cst_8 {dimension_numbers = #tpu.dot_dimension_numbers<[1], [0], [0], [1], [0, 0, 1, 1], [], []>} : vector<8x32xbf16>, vector<32x32xbf16>, vector<8x32xf32> -> vector<8x32xf32>
    %c0_9 = arith.constant 0 : index
    %c0_10 = arith.constant 0 : index
    %11 = vector.load %arg6[%c0_9, %c0_10] : memref<1x32xf32, #tpu.memory_space<vmem>>, vector<1x32xf32>
    %12 = vector.broadcast %11 : vector<1x32xf32> to vector<8x32xf32>
    %13 = arith.addf %10, %12 : vector<8x32xf32>
    %cst_11 = arith.constant 0.000000e+00 : f32
    %14 = vector.broadcast %cst_11 : f32 to vector<8x32xf32>
    %15 = arith.maximumf %13, %14 : vector<8x32xf32>
    %cst_12 = arith.constant 5.000000e-01 : f32
    %16 = vector.broadcast %cst_12 : f32 to vector<8x32xf32>
    %17 = arith.subf %15, %16 : vector<8x32xf32>
    %cst_13 = arith.constant 0.000000e+00 : f32
    %18 = vector.broadcast %cst_13 : f32 to vector<8x32xf32>
    %19 = arith.maximumf %17, %18 : vector<8x32xf32>
    %20 = vector.broadcast %cst_13 : f32 to vector<8x32xf32>
    %21 = arith.subf %17, %20 : vector<8x32xf32>
    %22 = arith.cmpf one, %21, %21 : vector<8x32xf32>
    %23 = vector.broadcast %cst_13 : f32 to vector<8x32xf32>
    %24 = arith.addf %17, %23 : vector<8x32xf32>
    %25 = math.absf %21 : vector<8x32xf32>
    %cst_14 = arith.constant 0.000000e+00 : f32
    %26 = vector.broadcast %cst_14 : f32 to vector<8x32xf32>
    %27 = arith.subf %26, %25 : vector<8x32xf32>
    %28 = math.exp %27 : vector<8x32xf32>
    %29 = math.log1p %28 : vector<8x32xf32>
    %30 = arith.addf %19, %29 : vector<8x32xf32>
    %31 = arith.select %22, %24, %30 : vector<8x32xi1>, vector<8x32xf32>
    %c0_15 = arith.constant 0 : index
    %c0_16 = arith.constant 0 : index
    %32 = vector.load %arg2[%c0_15, %c0_16] : memref<8x32xf32, #tpu.memory_space<vmem>>, vector<8x32xf32>
    %33 = arith.mulf %31, %32 : vector<8x32xf32>
    %34 = arith.addf %8, %33 : vector<8x32xf32>
    %35 = arith.truncf %34 : vector<8x32xf32> to vector<8x32xbf16>
    %c0_17 = arith.constant 0 : index
    %c0_18 = arith.constant 0 : index
    %36 = vector.load %arg7[%c0_17, %c0_18] : memref<32x64xbf16, #tpu.memory_space<vmem>>, vector<32x64xbf16>
    %cst_19 = arith.constant dense<0.000000e+00> : vector<8x64xf32>
    %37 = tpu.matmul %35, %36, %cst_19 {dimension_numbers = #tpu.dot_dimension_numbers<[1], [0], [0], [1], [0, 0, 1, 1], [], []>} : vector<8x32xbf16>, vector<32x64xbf16>, vector<8x64xf32> -> vector<8x64xf32>
    %c0_20 = arith.constant 0 : index
    %c0_21 = arith.constant 0 : index
    %38 = vector.load %arg8[%c0_20, %c0_21] : memref<1x64xf32, #tpu.memory_space<vmem>>, vector<1x64xf32>
    %39 = vector.broadcast %38 : vector<1x64xf32> to vector<8x64xf32>
    %40 = arith.addf %37, %39 : vector<8x64xf32>
    %cst_22 = arith.constant 0.000000e+00 : f32
    %41 = vector.broadcast %cst_22 : f32 to vector<8x64xf32>
    %42 = arith.maximumf %40, %41 : vector<8x64xf32>
    %43 = arith.truncf %42 : vector<8x64xf32> to vector<8x64xbf16>
    %c0_23 = arith.constant 0 : index
    %c0_24 = arith.constant 0 : index
    %44 = vector.load %arg9[%c0_23, %c0_24] : memref<64x128xbf16, #tpu.memory_space<vmem>>, vector<64x128xbf16>
    %cst_25 = arith.constant dense<0.000000e+00> : vector<8x128xf32>
    %45 = tpu.matmul %43, %44, %cst_25 {dimension_numbers = #tpu.dot_dimension_numbers<[1], [0], [0], [1], [0, 0, 1, 1], [], []>} : vector<8x64xbf16>, vector<64x128xbf16>, vector<8x128xf32> -> vector<8x128xf32>
    %c0_26 = arith.constant 0 : index
    %c0_27 = arith.constant 0 : index
    %46 = vector.load %arg10[%c0_26, %c0_27] : memref<1x128xf32, #tpu.memory_space<vmem>>, vector<1x128xf32>
    %47 = vector.broadcast %46 : vector<1x128xf32> to vector<8x128xf32>
    %48 = arith.addf %45, %47 : vector<8x128xf32>
    %cst_28 = arith.constant 0.000000e+00 : f32
    %49 = vector.broadcast %cst_28 : f32 to vector<8x128xf32>
    %50 = arith.maximumf %48, %49 : vector<8x128xf32>
    %51 = arith.truncf %50 : vector<8x128xf32> to vector<8x128xbf16>
    %c0_29 = arith.constant 0 : index
    %c0_30 = arith.constant 0 : index
    %52 = vector.load %arg11[%c0_29, %c0_30] : memref<8x128xbf16, #tpu.memory_space<vmem>>, vector<8x128xbf16>
    tpu.vector_store %arg11[%c0_29, %c0_30], %51 {strides = array<i32>} : memref<8x128xbf16, #tpu.memory_space<vmem>>, vector<8x128xbf16>,
    %53 = math.log %31 : vector<8x32xf32>
    %cst_31 = arith.constant 2.000000e+00 : f32
    %54 = vector.broadcast %cst_31 : f32 to vector<8x32xf32>
    %55 = arith.mulf %54, %53 : vector<8x32xf32>
    %cst_32 = arith.constant 1.000000e+00 : f32
    %56 = vector.broadcast %cst_32 : f32 to vector<8x32xf32>
    %57 = arith.addf %56, %55 : vector<8x32xf32>
    %58 = arith.mulf %8, %8 : vector<8x32xf32>
    %59 = arith.subf %57, %58 : vector<8x32xf32>
    %60 = arith.mulf %31, %31 : vector<8x32xf32>
    %61 = arith.subf %59, %60 : vector<8x32xf32>
    %cst_33 = arith.constant -5.000000e-01 : f32
    %62 = vector.broadcast %cst_33 : f32 to vector<8x32xf32>
    %63 = arith.mulf %62, %61 : vector<8x32xf32>
    %cst_34 = arith.constant dense<0.000000e+00> : vector<8xf32>
    %64 = vector.multi_reduction <add>, %63, %cst_34 [1] : vector<8x32xf32> to vector<8xf32>
    %65 = vector.shape_cast %64 : vector<8xf32> to vector<8x1xf32>
    %c8_i32 = arith.constant 8 : i32
    %66 = arith.muli %arg0, %c8_i32 : i32
    %67 = tpu.iota {dimensions = array<i32: 0>} : vector<8x1xi32>
    %68 = vector.broadcast %66 : i32 to vector<8x1xi32>
    %69 = arith.addi %68, %67 : vector<8x1xi32>
    %c8_i32_35 = arith.constant 8 : i32
    %70 = vector.broadcast %c8_i32_35 : i32 to vector<8x1xi32>
    %71 = arith.cmpi slt, %69, %70 : vector<8x1xi32>
    %cst_36 = arith.constant 0.000000e+00 : f32
    %72 = vector.broadcast %cst_36 : f32 to vector<8x1xf32>
    %73 = arith.select %71, %65, %72 : vector<8x1xi1>, vector<8x1xf32>
    %74 = vector.shape_cast %73 : vector<8x1xf32> to vector<1x8x1xf32>
    %cst_37 = arith.constant dense<0.000000e+00> : vector<1xf32>
    %75 = vector.multi_reduction <add>, %74, %cst_37 [1, 2] : vector<1x8x1xf32> to vector<1xf32>
    %76 = vector.shape_cast %75 : vector<1xf32> to vector<1x1x1xf32>
    %77 = vector.extract %76[0, 0, 0] : f32 from vector<1x1x1xf32>
    %78 = vector.broadcast %77 : f32 to vector<1x8x128xf32>
    %c0_38 = arith.constant 0 : index
    %c0_39 = arith.constant 0 : index
    %c0_40 = arith.constant 0 : index
    %79 = vector.load %arg12[%c0_38, %c0_39, %c0_40] : memref<1x8x128xf32, #tpu.memory_space<vmem>>, vector<1x8x128xf32>
    tpu.vector_store %arg12[%c0_38, %c0_39, %c0_40], %78 {strides = array<i32>} : memref<1x8x128xf32, #tpu.memory_space<vmem>>, vector<1x8x128xf32>,
    return
  }
  func.func @transform_0(%arg0: i32) -> (i32, i32) {
    %c0_i32 = arith.constant 0 : i32
    %c0_i32_0 = arith.constant 0 : i32
    return %arg0, %c0_i32 : i32, i32
  }
  func.func @transform_1(%arg0: i32) -> (i32, i32) {
    %c0_i32 = arith.constant 0 : i32
    %c0_i32_0 = arith.constant 0 : i32
    return %arg0, %c0_i32 : i32, i32
  }
  func.func @transform_2(%arg0: i32) -> (i32, i32) {
    %c0_i32 = arith.constant 0 : i32
    %c0_i32_0 = arith.constant 0 : i32
    %c0_i32_1 = arith.constant 0 : i32
    return %c0_i32, %c0_i32_0 : i32, i32
  }
  func.func @transform_3(%arg0: i32) -> (i32, i32) {
    %c0_i32 = arith.constant 0 : i32
    %c0_i32_0 = arith.constant 0 : i32
    %c0_i32_1 = arith.constant 0 : i32
    return %c0_i32, %c0_i32_0 : i32, i32
  }
  func.func @transform_4(%arg0: i32) -> (i32, i32) {
    %c0_i32 = arith.constant 0 : i32
    %c0_i32_0 = arith.constant 0 : i32
    %c0_i32_1 = arith.constant 0 : i32
    return %c0_i32, %c0_i32_0 : i32, i32
  }
  func.func @transform_5(%arg0: i32) -> (i32, i32) {
    %c0_i32 = arith.constant 0 : i32
    %c0_i32_0 = arith.constant 0 : i32
    %c0_i32_1 = arith.constant 0 : i32
    return %c0_i32, %c0_i32_0 : i32, i32
  }
  func.func @transform_6(%arg0: i32) -> (i32, i32) {
    %c0_i32 = arith.constant 0 : i32
    %c0_i32_0 = arith.constant 0 : i32
    %c0_i32_1 = arith.constant 0 : i32
    return %c0_i32, %c0_i32_0 : i32, i32
  }
  func.func @transform_7(%arg0: i32) -> (i32, i32) {
    %c0_i32 = arith.constant 0 : i32
    %c0_i32_0 = arith.constant 0 : i32
    %c0_i32_1 = arith.constant 0 : i32
    return %c0_i32, %c0_i32_0 : i32, i32
  }
  func.func @transform_8(%arg0: i32) -> (i32, i32) {
    %c0_i32 = arith.constant 0 : i32
    %c0_i32_0 = arith.constant 0 : i32
    %c0_i32_1 = arith.constant 0 : i32
    return %c0_i32, %c0_i32_0 : i32, i32
  }
  func.func @transform_9(%arg0: i32) -> (i32, i32) {
    %c0_i32 = arith.constant 0 : i32
    %c0_i32_0 = arith.constant 0 : i32
    %c0_i32_1 = arith.constant 0 : i32
    return %c0_i32, %c0_i32_0 : i32, i32
  }
  func.func @transform_10(%arg0: i32) -> (i32, i32) {
    %c0_i32 = arith.constant 0 : i32
    %c0_i32_0 = arith.constant 0 : i32
    return %arg0, %c0_i32 : i32, i32
  }
  func.func @transform_11(%arg0: i32) -> (i32, i32, i32) {
    %c0_i32 = arith.constant 0 : i32
    %c0_i32_0 = arith.constant 0 : i32
    %c0_i32_1 = arith.constant 0 : i32
    return %arg0, %c0_i32, %c0_i32_0 : i32, i32, i32
  }
}

</mosaic_0001>

<bundles_post_ra>
// kernel: tpu_custom_call.1
= control target key start
LH: loop header
LB: loop body
LE: loop exit
PB: predicated region body
PF: predicated region fallthrough
CT: control target
= control target key end

     0   :  { %17 = vsyncpa [#allocation3], 0  ;;  %s780_s0 = inlined_call_operand.hbm [shape: f32[8,32], index: 0, kind: input, shape index: {}]   ;;  %s781_s1 = inlined_call_operand.hbm [shape: f32[8,32], index: 1, kind: input, shape index: {}]   ;;  %s782_s2 = inlined_call_operand.hbm [shape: bf16[32,32], index: 2, kind: input, shape index: {}]   ;;  %s783_s3 = inlined_call_operand.vmem [shape: f32[1,32], index: 3, kind: input, shape index: {}]   ;;  %s784_s4 = inlined_call_operand.hbm [shape: bf16[32,32], index: 4, kind: input, shape index: {}]   ;;  %s785_s5 = inlined_call_operand.vmem [shape: f32[1,32], index: 5, kind: input, shape index: {}]   ;;  %s786_s6 = inlined_call_operand.hbm [shape: bf16[32,64], index: 6, kind: input, shape index: {}]   ;;  %s787_s7 = inlined_call_operand.vmem [shape: f32[1,64], index: 7, kind: input, shape index: {}]   ;;  %s788_s8 = inlined_call_operand.hbm [shape: bf16[64,128], index: 8, kind: input, shape index: {}]   ;;  %s789_s9 = inlined_call_operand.vmem [shape: f32[1,128], index: 9, kind: input, shape index: {}]   ;;  %s790_s10 = inlined_call_operand.hbm [shape: bf16[8,128], index: 10, kind: output, shape index: {0}]   ;;  %s791_s11 = inlined_call_operand.hbm [shape: f32[1,8,128], index: 11, kind: output, shape index: {1}]  }
   0x1   :  { %18 = vsyncpa [#allocation6], 0 }
   0x2   :  { %19 = vsyncpa [#allocation9], 0 }
   0x3   :  { %20 = vsyncpa [#allocation12], 0 }
   0x4   :  { %21 = vsyncpa [#allocation4], 0  ;;  %s39_s19 = sshll.u32 %s781_s1, 4  ;;  %s40_s19 = int_to_ptr.hbm [resolvable:$true] %s39_s19 }
   0x5   :  { %22 = vsyncpa [#allocation15], 0  ;;  %s670_s20 = smov [#allocation5]   ;;  %s64_s24 = sshll.u32 %s784_s4, 4  ;;  %s65_s24 = int_to_ptr.hbm [resolvable:$true] %s64_s24 }
   0x6   :  { %s41_s21 = sshll.u32 %s670_s20, 4  ;;  %s671_s25 = smov [#allocation8]   ;;  %s42_s21 = int_to_ptr.vmem [resolvable:$true] %s41_s21 }
   0x7   :  { %44 = dma.hbm_to_vmem [thread:$0]  %s40_s19, 128, %s42_s21, [#allocation6]  }
   0x8   :  { %s66_s26 = sshll.u32 %s671_s25, 4  ;;  %s28_s29 = sshll.u32 %s780_s0, 4  ;;  %s67_s26 = int_to_ptr.vmem [resolvable:$true] %s66_s26  ;;  %s29_s29 = int_to_ptr.hbm [resolvable:$true] %s28_s29 }
   0x9   :  { %s672_s1 = smov 64   ;;  %s673_s30 = smov 4  }
   0xa   :  { %72 = dma.hbm_to_vmem [thread:$0]  %s65_s24, 256, %s67_s26, [#allocation9], %s672_s1, %s672_s1, %s673_s30  }
   0xb   :  { %s49_s14 = sshll.u32 %s782_s2, 4  ;;  %s674_s15 = smov [#allocation2]   ;;  %s50_s14 = int_to_ptr.hbm [resolvable:$true] %s49_s14 }
   0xc   :  { %s30_s16 = sshll.u32 %s674_s15, 4  ;;  %s675_s4 = smov [#allocation7]   ;;  %s31_s16 = int_to_ptr.vmem [resolvable:$true] %s30_s16 }
   0xd   :  { %33 = dma.hbm_to_vmem [thread:$0]  %s29_s29, 128, %s31_s16, [#allocation3]  }
   0xe   :  { %s51_s17 = sshll.u32 %s675_s4, 4  ;;  %s79_s0 = sshll.u32 %s786_s6, 4  ;;  %s52_s17 = int_to_ptr.vmem [resolvable:$true] %s51_s17  ;;  %s80_s0 = int_to_ptr.hbm [resolvable:$true] %s79_s0 }
   0xf   :  { %57 = dma.hbm_to_vmem [thread:$0]  %s50_s14, 256, %s52_s17, [#allocation6], %s672_s1, %s672_s1, %s673_s30  }
  0x10   :  { %s94_s22 = sshll.u32 %s788_s8, 4  ;;  %s676_s23 = smov [#allocation10]   ;;  %s95_s22 = int_to_ptr.hbm [resolvable:$true] %s94_s22 }
  0x11   :  { %s81_s2 = sshll.u32 %s676_s23, 4  ;;  %s677_s24 = smov [#allocation11]   ;;  %s82_s2 = int_to_ptr.vmem [resolvable:$true] %s81_s2 }
  0x12   :  { %87 = dma.hbm_to_vmem [thread:$0]  %s80_s0, 256, %s82_s2, [#allocation9], %s672_s1, %s672_s1, %s673_s30  }
  0x13   :  { %s96_s25 = sshll.u32 %s677_s24, 4  ;;  %s97_s25 = int_to_ptr.vmem [resolvable:$true] %s96_s25 }
  0x14   :  { %102 = dma.hbm_to_vmem [thread:$0]  %s95_s22, 512, %s97_s25, [#allocation12], %s672_s1, %s672_s1, %s673_s30  }
  0x15   :  { %658 = dma.done.wait [#allocation3], 128  }
  0x16   :  { %659 = vsyncadd [#allocation3], 4294967168 }
  0x17   :  { %660 = dma.done.wait [#allocation6], 384  }
  0x18   :  { %661 = vsyncadd [#allocation6], 4294966912 }
  0x19   :  { %662 = dma.done.wait [#allocation9], 512  }
  0x1a   :  { %663 = vsyncadd [#allocation9], 4294966784 }
  0x1b   :  { %664 = dma.done.wait [#allocation12], 512  }
  0x1c   :  { %665 = vsyncadd [#allocation12], 4294966784  ;;  %v437_v0 = vld [vmem:[#allocation8 + $0x8] sm:$0xff]  ;;  %v436_v1 = vld [vmem:[#allocation8] sm:$0xff]  ;;  %vm152_vm0 = vcmask 261120   ;;  %vm340_vm3 = vcmask 7168  }
  0x1d   :  { %v435_v2 = vld [vmem:[#allocation7 + $0x8] sm:$0xff]  ;;  %196 = vmatpush.bf16.msra.mxu1 %v437_v0  ;;  %v130_v3 = vld [vmem:[#allocation2] sm:$0xff]  ;;  %v434_v4 = vld [vmem:[#allocation7] sm:$0xff]  ;;  %vm301_vm4 = vcmask 523264   ;;  %s678_s29 = smov [#allocation13]   ;;  %s360_s13 = sshll.u32 %s790_s10, 4  ;;  %s361_s13 = int_to_ptr.hbm [resolvable:$true] %s360_s13 }
  0x1e   :  { %162 = vmatpush.bf16.msra.mxu0 %v435_v2  ;;  %v131_v5 = vpack.c.bf16 %v130_v3, %v130_v3  ;;  %v456_v6 = vld [vmem:[%s785_s5] ss:$0 sm:$0xff]  ;;  %v439_v8 = vld [vmem:[#allocation10 + $0x8] sm:$0xff]  ;;  %v438_v12 = vld [vmem:[#allocation10] sm:$0xff]  ;;  %s358_s1 = sshll.u32 %s678_s29, 4  ;;  %s679_s14 = smov [#allocation14]   ;;  %s359_s1 = int_to_ptr.vmem [resolvable:$true] %s358_s1 }
  0x1f   :  { %256 = vmatpush.bf16.msra.mxu2 %v439_v8  ;;  %v443_v22 = vld [vmem:[#allocation11 + $0x18] sm:$0xff]  ;;  %v457_v24 = vld [vmem:[%s783_s3] ss:$0 sm:$0xff]  ;;  %v442_v25 = vld [vmem:[#allocation11 + $0x10] sm:$0xff]  ;;  %s369_s15 = sshll.u32 %s679_s14, 4  ;;  %s370_s15 = int_to_ptr.vmem [resolvable:$true] %s369_s15 }
  0x20   :  { %309 = vmatpush.bf16.msra.mxu3 %v443_v22  ;;  %v223_v34 = vld [vmem:[#allocation5] sm:$0xff]  ;;  %v440_v51 = vld [vmem:[#allocation11] sm:$0xff] }
  0x21   :  { %197 = vmatpush.bf16.msra.mxu1 %v436_v1  ;;  %v441_v50 = vld [vmem:[#allocation11 + $0x8] sm:$0xff]  ;;  %v458_v52 = vld [vmem:[%s787_s7] ss:$0 sm:$0xff] }
  0x22   :  { %163 = vmatpush.bf16.msra.mxu0 %v434_v4  ;;  %v459_v3 = vld [vmem:[%s789_s9] ss:$0 sm:$0xff]  ;;  %s371_s9 = sshll.u32 %s791_s11, 4  ;;  %s372_s9 = int_to_ptr.hbm [resolvable:$true] %s371_s9 }
  0x23   :  { %257 = vmatpush.bf16.msra.mxu2 %v438_v12 }
  0x24   :  { %406 = vmatmul.msk.bf16.vlgmr.msra.gmra.mxu1 %vm152_vm0, %v131_v5  ;;  %310 = vmatpush.bf16.msra.mxu3 %v442_v25 }
  0x25   :  { %397 = vmatmul.msk.bf16.vlgmr.msra.gmra.mxu0 %vm152_vm0, %v131_v5 }
  0x28   :  { %311 = vmatpush.bf16.msra.mxu3 %v441_v50 }
  0x2c   :  { %312 = vmatpush.bf16.msra.mxu3 %v440_v51 }
  0xa1   :  { %v199_v7 = vpop.f32.mrf.mxu1 }
  0xa2   :  { %v200_v9 = vadd.f32 %v456_v6, %v199_v7  ;;  %v165_v10 = vpop.f32.mrf.mxu0 }
  0xa3   :  { %v166_v30 = vadd.f32 %v457_v24, %v165_v10 }
  0xa4   :  { %v203_v11 = vmax.f32 %v200_v9, 0.0 }
  0xa5   :  { %v169_v35 = vmax.f32 %v166_v30, 0.0 }
  0xa6   :  { %v407_v13 = vadd.f32 -0.5, %v203_v11 }
  0xa7   :  { %v325_v42 = vmul.f32 %v169_v35, %v169_v35 }
  0xa8   :  { %v208_v14 = vand.u32 2147483647, %v407_v13  ;;  %v205_v31 = vmax.f32 %v407_v13, 0.0  ;;  %vm206_vm2 = vcmp.ne.f32.partialorder %v407_v13, %v407_v13 }
  0xa9   :  { %v201_v15 = vpop.f32.mrf.mxu1 }
  0xaa   :  { %v209_v16 = vsub.f32 0.0, %v208_v14  ;;  %v167_v17 = vpop.f32.mrf.mxu0 }
  0xac   :  { %v210_v18 = vmul.f32 1.442695, %v209_v16 }
  0xae   :  { %460 = vpow2.f32 %v210_v18 }
  0xb4   :  { %v461_v19 = vpop.eup %460 }
  0xb5   :  { %v212_v20 = vadd.f32 1.0, %v461_v19  ;;  %v215_v21 = vmul.f32 -0.5, %v461_v19  ;;  %v218_v26 = vand.u32 2147483647, %v461_v19 }
  0xb7   :  { %462 = vlog2.f32 %v212_v20  ;;  %v216_v23 = vadd.f32 1.0, %v215_v21  ;;  %vm219_vm1 = vcmp.lt.f32.partialorder %v218_v26, 0.0004427343 }
  0xb9   :  { %v217_v29 = vmul.f32 %v461_v19, %v216_v23 }
  0xbd   :  { %v463_v27 = vpop.eup %462 }
  0xbe   :  { %v214_v28 = vmul.f32 0.6931472, %v463_v27 }
  0xc0   :  { %v220_v32 = vsel %vm219_vm1, %v217_v29, %v214_v28 }
  0xc1   :  { %v221_v33 = vadd.f32 %v220_v32, %v205_v31 }
  0xc3   :  { %v222_v36 = vsel %vm206_vm2, %v407_v13, %v221_v33 }
  0xc4   :  { %v224_v37 = vmul.f32 %v223_v34, %v222_v36  ;;  %464 = vlog2.f32 %v222_v36  ;;  %v327_v46 = vmul.f32 %v222_v36, %v222_v36 }
  0xc6   :  { %v225_v38 = vadd.f32 %v224_v37, %v169_v35 }
  0xc8   :  { %v226_v39 = vpack.c.bf16 %v225_v38, %v225_v38 }
  0xca   :  { %v465_v40 = vpop.eup %464  ;;  %416 = vmatmul.msk.bf16.vlgmr.msra.gmra.mxu2 %vm152_vm0, %v226_v39 }
  0xcb   :  { %v322_v41 = vmul.f32 0.6931472, %v465_v40 }
  0xcd   :  { %v323_v43 = vmul.f32 2.0, %v322_v41 }
  0xcf   :  { %v324_v44 = vadd.f32 1.0, %v323_v43 }
  0xd1   :  { %v326_v45 = vsub.f32 %v324_v44, %v325_v42 }
  0xd3   :  { %v328_v47 = vsub.f32 %v326_v45, %v327_v46 }
  0xd5   :  { %v329_v48 = vmul.f32 -0.5, %v328_v47 }
  0xd7   :  { %v330_v49 = vsel %vm152_vm0, %v329_v48, 0.0 }
  0xd8   :  { %331 = vadd.xlane.f32.xlu0 %v330_v49 }
 0x14b   :  { %v332_v53 = vpop.xlane.xlu0 %331 }
 0x14c   :  { %v341_v54 = vsel %vm340_vm3, %v332_v53, 0.0 }
 0x14d   :  { %342 = vadd.xlane.f32.xlu0 %v341_v54  ;;  %v259_v55 = vpop.f32.mrf.mxu2 }
 0x14e   :  { %v260_v56 = vadd.f32 %v458_v52, %v259_v55 }
 0x150   :  { %v263_v57 = vmax.f32 %v260_v56, 0.0 }
 0x152   :  { %v264_v58 = vpack.c.bf16 %v263_v57, %v263_v57 }
 0x154   :  { %433 = vmatmul.msk.bf16.vlgmr.msra.gmra.mxu3 %vm301_vm4, %v264_v58 }
 0x155   :  { %v261_v59 = vpop.f32.mrf.mxu2 }
 0x1c0   :  { %v343_v60 = vpop.xlane.xlu0 %342 }
 0x1c1   :  { %v344_v61 = vrot.slane %v343_v60, 4 }
 0x1c3   :  { %v345_v62 = vadd.f32 %v344_v61, %v343_v60 }
 0x1c5   :  { %v346_v63 = vrot.slane %v345_v62, 2 }
 0x1c7   :  { %v347_v0 = vadd.f32 %v346_v63, %v345_v62 }
 0x1c9   :  { %v348_v1 = vrot.slane %v347_v0, 1 }
 0x1cb   :  { %v349_v2 = vadd.f32 %v348_v1, %v347_v0 }
 0x1cd   :  { %444 = vpush %v349_v2 }
 0x1d7   :  { %v314_v4 = vpop.f32.mrf.mxu3 }
 0x1d8   :  { %v315_v5 = vadd.f32 %v459_v3, %v314_v4 }
 0x1da   :  { %v318_v6 = vmax.f32 %v315_v5, 0.0 }
 0x1dc   :  { %v319_v7 = vpack.c.bf16 %v318_v6, %v318_v6 }
 0x1de   :  { %320 = vst [vmem:[#allocation13] sm:$0xf] %v319_v7 }
 0x1df   :  { %v316_v8 = vpop.f32.mrf.mxu3  ;;  %363 = dma.vmem_to_hbm [thread:$0]  %s359_s1, 64, %s361_s13, [#allocation4]  }
 0x1fe   :  { %s445_s17 = spop %444 }
 0x1ff   :  { %v351_v9 = vstv %s445_s17 }
 0x200   :  { %352 = vst [vmem:[#allocation14] sm:$0xff] %v351_v9 }
 0x201   :  { %374 = dma.vmem_to_hbm [thread:$0]  %s370_s15, 128, %s372_s9, [#allocation15]  }
 0x202   :  { %666 = dma.done.wait [#allocation4], 64  }
 0x203   :  { %667 = vsyncadd [#allocation4], 4294967232 }
 0x204   :  { %668 = dma.done.wait [#allocation15], 128  }
 0x205   :  { %669 = vsyncadd [#allocation15], 4294967168 }
 0x206   :  { %383 = vsyncpa [#allocation3], 1 }
 0x207   :  { %384 = vsyncpa [#allocation6], 1 }
 0x208   :  { %385 = vsyncpa [#allocation9], 1 }
 0x209   :  { %386 = vsyncpa [#allocation12], 1 }
 0x20a   :  { %387 = vsyncpa [#allocation4], 1 }
 0x20b   :  { %388 = vsyncpa [#allocation15], 1 }

</bundles_post_ra>
